<compile_context>
chip_gen: v7x
topology: tpu7x:2x2x1
jax: 0.10.0
libtpu: 0.0.40
codegen_flags: <defaults>
</compile_context>

<pallas_src>
import jax
import jax.numpy as jnp
from jax import lax
from jax.experimental import pallas as pl
from jax.experimental.pallas import tpu as pltpu

LANE = 128        # TPU lane width
SUBLANE = 8       # f32 sublane tile
DEFAULT_TB = 512  # max batch tile (amortizes ~0.35 us/grid-step overhead)


def _round_up(x, m):
    return ((x + m - 1) // m) * m


def fc_encoder_kernel(x_ref,
                      w1_ref, b1_ref,
                      w2_ref, b2_ref,
                      w3_ref, b3_ref,
                      w4t_ref, b4t_ref,
                      o_ref):
    """One (tb, D) batch tile -> one (latent_pad8, tb) transposed output tile.

    Weights/biases are VMEM-resident (constant index_map, single-buffered). MXU matmuls
    run in bf16 with f32 accumulation; bias-add / ReLU stay f32 on the VPU (v5e has no
    bf16 VALU)."""
    h = x_ref[...].astype(jnp.bfloat16)
    h = jnp.maximum(
        jnp.dot(h, w1_ref[...], preferred_element_type=jnp.float32) + b1_ref[...], 0.0)
    h = jnp.maximum(
        jnp.dot(h.astype(jnp.bfloat16), w2_ref[...],
                preferred_element_type=jnp.float32) + b2_ref[...], 0.0)
    h = jnp.maximum(
        jnp.dot(h.astype(jnp.bfloat16), w3_ref[...],
                preferred_element_type=jnp.float32) + b3_ref[...], 0.0)
    # Final layer computed transposed (same pattern as q @ k.T): contract (Lp8, E) with
    # (tb, E) over E -> (Lp8, tb), i.e. batch on the lane axis. This shrinks the padded
    # f32 writeback ~16x vs a (tb, 128)-lane-padded slab while keeping f32 outputs.
    y_t = lax.dot_general(w4t_ref[...], h.astype(jnp.bfloat16),
                          dimension_numbers=(((1,), (1,)), ((), ())),
                          preferred_element_type=jnp.float32)
    o_ref[...] = y_t + b4t_ref[...]


def init_params(key, input_prod_size, enc_out_dim, latent_dim):
    """Deterministic init mimicking PyTorch nn.Linear default: U(-1/sqrt(in), 1/sqrt(in)).

    Weights stored as (in_features, out_features) so the kernel computes x @ W + b
    (equivalent to PyTorch's y = x @ W.T + b with W pre-transposed)."""
    dims = [(input_prod_size, input_prod_size),   # fc1
            (input_prod_size, enc_out_dim),       # fc2
            (enc_out_dim, enc_out_dim),           # fc3
            (enc_out_dim, latent_dim)]            # linear
    params = {}
    for i, (fan_in, fan_out) in enumerate(dims, start=1):
        key, kw, kb = jax.random.split(key, 3)
        bound = 1.0 / jnp.sqrt(jnp.float32(fan_in))
        params[f"w{i}"] = jax.random.uniform(
            kw, (fan_in, fan_out), jnp.float32, -bound, bound)
        params[f"b{i}"] = jax.random.uniform(
            kb, (1, fan_out), jnp.float32, -bound, bound)
    return params


def prepare_params(params_f32):
    """Cast weights to bf16; pre-transpose + sublane-pad the last layer to (latent_pad8, E)."""
    latent_dim = params_f32["w4"].shape[1]
    lp8 = _round_up(latent_dim, SUBLANE)
    pad = lp8 - latent_dim
    prep = {
        "w1": params_f32["w1"].astype(jnp.bfloat16), "b1": params_f32["b1"],
        "w2": params_f32["w2"].astype(jnp.bfloat16), "b2": params_f32["b2"],
        "w3": params_f32["w3"].astype(jnp.bfloat16), "b3": params_f32["b3"],
        # Last layer stored transposed: w4t (lp8, E) bf16, b4t (lp8, 1) f32.
        "w4t": jnp.pad(params_f32["w4"], ((0, 0), (0, pad))).T.astype(jnp.bfloat16),
        "b4t": jnp.pad(params_f32["b4"], ((0, 0), (0, pad))).T,
    }
    return prep, latent_dim


def fc_encoder(x, prep, latent_dim):
    """x: [B, D] float32 (or bfloat16). prep: prepared (bf16-weight, transposed-last-layer) params."""
    B, D = x.shape
    assert prep["w1"].shape[0] == D
    E = prep["w2"].shape[1]
    Lp8 = prep["w4t"].shape[0]

    # Batch tiling: no wrapper-side padding of x (Pallas handles the ragged tail block;
    # safe because rows are independent and tail results are never read back).
    if B <= LANE:
        tb = B                                                # single full-array tile
    else:
        # >= 2 grid steps where possible (dual-TC on v7x), lane-dense (multiple-of-128)
        # tiles so the transposed output block keeps unmasked stores.
        tb = min(DEFAULT_TB, _round_up(pl.cdiv(B, 2), LANE))
    grid = (pl.cdiv(B, tb),)

    def const_spec(shape):
        # Constant block: DMA'd once, stays VMEM-resident; single-buffered.
        return pl.BlockSpec(shape, lambda i: (0, 0), pipeline_mode=pl.Buffered(1))

    in_specs = [
        pl.BlockSpec((tb, D), lambda i: (i, 0)),              # x tile, double-buffered
        const_spec(prep["w1"].shape), const_spec(prep["b1"].shape),
        const_spec(prep["w2"].shape), const_spec(prep["b2"].shape),
        const_spec(prep["w3"].shape), const_spec(prep["b3"].shape),
        const_spec(prep["w4t"].shape), const_spec(prep["b4t"].shape),
    ]
    out_spec = pl.BlockSpec((Lp8, tb), lambda i: (0, i))       # batch on the lane axis

    # Advisory cost estimate for XLA scheduling around the custom call.
    param_bytes = sum(int(v.size) * v.dtype.itemsize for v in prep.values())
    flops = 2 * B * (D * D + D * E + E * E + E * Lp8)
    bytes_accessed = int(x.size) * x.dtype.itemsize + B * Lp8 * 4 + param_bytes
    cost = pl.CostEstimate(flops=flops, transcendentals=0,
                           bytes_accessed=int(bytes_accessed))

    # VMEM accounting: single-buffered weights + double-buffered x/out tiles + in-kernel
    # intermediates (f32 hidden activations plus their bf16 MXU copies).
    x_tile_bytes = 2 * tb * D * x.dtype.itemsize
    out_tile_bytes = 2 * Lp8 * tb * 4
    interm_bytes = tb * ((D + 2 * E) * 4 + (2 * D + 2 * E) * 2)
    resident = param_bytes + x_tile_bytes + out_tile_bytes + interm_bytes

    # Generation-aware scoped-VMEM limit (v5e default 16 MiB, v6e/v7x 32 MiB; v7x
    # physical per-TC VMEM is only 64 MiB, so never request more than ~85% of capacity).
    try:
        vmem_cap = int(pltpu.get_tpu_info().vmem_capacity_bytes)
    except Exception:
        vmem_cap = 64 << 20   # conservative fallback: v7x per-TC VMEM
    vmem_limit = int(min(max(resident + (16 << 20), 32 << 20), int(0.85 * vmem_cap)))
    # TODO(synk): if D/E scale until `resident` no longer fits the capped limit, K-tile
    # fc1/fc2 with a reduction grid axis + f32 accumulator scratch instead of keeping all
    # weights fully VMEM-resident.

    out_t = pl.pallas_call(
        fc_encoder_kernel,
        out_shape=jax.ShapeDtypeStruct((Lp8, B), jnp.float32),
        grid=grid,
        in_specs=in_specs,
        out_specs=out_spec,
        compiler_params=pltpu.CompilerParams(
            dimension_semantics=("parallel",),   # v7x: shard batch grid over both TCs
            vmem_limit_bytes=vmem_limit),
        cost_estimate=cost,
    )(x,
      prep["w1"], prep["b1"],
      prep["w2"], prep["b2"],
      prep["w3"], prep["b3"],
      prep["w4t"], prep["b4t"])
    # Tiny (latent, B) slab -> (B, latent); slice+transpose is negligible XLA work.
    return out_t[:latent_dim, :].T


def fc_encoder_ref(x, prep, latent_dim):
    """Pure-JAX reference with identical numerics (bf16 weights, f32 accumulation).

    NOTE: versus the original all-f32 PyTorch FC_Encoder, bf16 operands give ~1e-2-level
    relative deviation; this check only bounds kernel-vs-JAX agreement."""
    def lin(h, w, b):
        return jnp.dot(h.astype(jnp.bfloat16), w,
                       preferred_element_type=jnp.float32) + b
    h = jnp.maximum(lin(x, prep["w1"], prep["b1"]), 0.0)
    h = jnp.maximum(lin(h, prep["w2"], prep["b2"]), 0.0)
    h = jnp.maximum(lin(h, prep["w3"], prep["b3"]), 0.0)
    y = lin(h, prep["w4t"].T, prep["b4t"].T)
    return y[:, :latent_dim]


if __name__ == "__main__":
    # Small shapes consistent with the module: each batch item is a flat feature vector.
    B, input_prod_size, enc_out_dim, latent_dim = 8, 256, 128, 2

    key = jax.random.PRNGKey(0)
    key, kx = jax.random.split(key)
    x = jax.random.normal(kx, (B, input_prod_size), jnp.float32)
    params_f32 = init_params(key, input_prod_size, enc_out_dim, latent_dim)
    prep, latent_dim = prepare_params(params_f32)

    out = fc_encoder(x, prep, latent_dim)
    out = jax.block_until_ready(out)

    ref = fc_encoder_ref(x, prep, latent_dim)
    assert out.shape == (B, latent_dim)
    assert jnp.allclose(out, ref, atol=2e-3, rtol=2e-3), "mismatch vs pure-JAX reference"

    print("KERNEL_OK")
</pallas_src>

<mosaic_0001>
module attributes {stable_mosaic.version = 11 : i64} {
  func.func @fc_encoder_kernel(%arg0: i32, %arg1: memref<8x256xf32, #tpu.memory_space<vmem>>, %arg2: memref<256x256xbf16, #tpu.memory_space<vmem>>, %arg3: memref<1x256xf32, #tpu.memory_space<vmem>>, %arg4: memref<256x128xbf16, #tpu.memory_space<vmem>>, %arg5: memref<1x128xf32, #tpu.memory_space<vmem>>, %arg6: memref<128x128xbf16, #tpu.memory_space<vmem>>, %arg7: memref<1x128xf32, #tpu.memory_space<vmem>>, %arg8: memref<8x128xbf16, #tpu.memory_space<vmem>>, %arg9: memref<8x1xf32, #tpu.memory_space<vmem>>, %arg10: memref<8x8xf32, #tpu.memory_space<vmem>>) attributes {dimension_semantics = [#tpu.dimension_semantics<parallel>], iteration_bounds = array<i64: 1>, scalar_prefetch = 0 : i64, scratch_operands = 0 : i64, tpu.core_type = #tpu.core_type<tc>, window_params = [{transform_indices = @transform_0, window_bounds = array<i64: 8, 256>}, {pipeline_mode = #tpu.pipeline_mode<synchronous>, transform_indices = @transform_1, window_bounds = array<i64: 256, 256>}, {pipeline_mode = #tpu.pipeline_mode<synchronous>, transform_indices = @transform_2, window_bounds = array<i64: 1, 256>}, {pipeline_mode = #tpu.pipeline_mode<synchronous>, transform_indices = @transform_3, window_bounds = array<i64: 256, 128>}, {pipeline_mode = #tpu.pipeline_mode<synchronous>, transform_indices = @transform_4, window_bounds = array<i64: 1, 128>}, {pipeline_mode = #tpu.pipeline_mode<synchronous>, transform_indices = @transform_5, window_bounds = array<i64: 128, 128>}, {pipeline_mode = #tpu.pipeline_mode<synchronous>, transform_indices = @transform_6, window_bounds = array<i64: 1, 128>}, {pipeline_mode = #tpu.pipeline_mode<synchronous>, transform_indices = @transform_7, window_bounds = array<i64: 8, 128>}, {pipeline_mode = #tpu.pipeline_mode<synchronous>, transform_indices = @transform_8, window_bounds = array<i64: 8, 1>}, {transform_indices = @transform_9, window_bounds = array<i64: 8, 8>}]} {
    %c0 = arith.constant 0 : index
    %c0_0 = arith.constant 0 : index
    %0 = vector.load %arg1[%c0, %c0_0] : memref<8x256xf32, #tpu.memory_space<vmem>>, vector<8x256xf32>
    %1 = arith.truncf %0 : vector<8x256xf32> to vector<8x256xbf16>
    %c0_1 = arith.constant 0 : index
    %c0_2 = arith.constant 0 : index
    %2 = vector.load %arg2[%c0_1, %c0_2] : memref<256x256xbf16, #tpu.memory_space<vmem>>, vector<256x256xbf16>
    %cst = arith.constant dense<0.000000e+00> : vector<8x256xf32>
    %3 = tpu.matmul %1, %2, %cst {dimension_numbers = #tpu.dot_dimension_numbers<[1], [0], [0], [1], [0, 0, 1, 1], [], []>} : vector<8x256xbf16>, vector<256x256xbf16>, vector<8x256xf32> -> vector<8x256xf32>
    %c0_3 = arith.constant 0 : index
    %c0_4 = arith.constant 0 : index
    %4 = vector.load %arg3[%c0_3, %c0_4] : memref<1x256xf32, #tpu.memory_space<vmem>>, vector<1x256xf32>
    %5 = vector.broadcast %4 : vector<1x256xf32> to vector<8x256xf32>
    %6 = arith.addf %3, %5 : vector<8x256xf32>
    %cst_5 = arith.constant 0.000000e+00 : f32
    %7 = vector.broadcast %cst_5 : f32 to vector<8x256xf32>
    %8 = arith.maximumf %6, %7 : vector<8x256xf32>
    %9 = arith.truncf %8 : vector<8x256xf32> to vector<8x256xbf16>
    %c0_6 = arith.constant 0 : index
    %c0_7 = arith.constant 0 : index
    %10 = vector.load %arg4[%c0_6, %c0_7] : memref<256x128xbf16, #tpu.memory_space<vmem>>, vector<256x128xbf16>
    %cst_8 = arith.constant dense<0.000000e+00> : vector<8x128xf32>
    %11 = tpu.matmul %9, %10, %cst_8 {dimension_numbers = #tpu.dot_dimension_numbers<[1], [0], [0], [1], [0, 0, 1, 1], [], []>} : vector<8x256xbf16>, vector<256x128xbf16>, vector<8x128xf32> -> vector<8x128xf32>
    %c0_9 = arith.constant 0 : index
    %c0_10 = arith.constant 0 : index
    %12 = vector.load %arg5[%c0_9, %c0_10] : memref<1x128xf32, #tpu.memory_space<vmem>>, vector<1x128xf32>
    %13 = vector.broadcast %12 : vector<1x128xf32> to vector<8x128xf32>
    %14 = arith.addf %11, %13 : vector<8x128xf32>
    %cst_11 = arith.constant 0.000000e+00 : f32
    %15 = vector.broadcast %cst_11 : f32 to vector<8x128xf32>
    %16 = arith.maximumf %14, %15 : vector<8x128xf32>
    %17 = arith.truncf %16 : vector<8x128xf32> to vector<8x128xbf16>
    %c0_12 = arith.constant 0 : index
    %c0_13 = arith.constant 0 : index
    %18 = vector.load %arg6[%c0_12, %c0_13] : memref<128x128xbf16, #tpu.memory_space<vmem>>, vector<128x128xbf16>
    %cst_14 = arith.constant dense<0.000000e+00> : vector<8x128xf32>
    %19 = tpu.matmul %17, %18, %cst_14 {dimension_numbers = #tpu.dot_dimension_numbers<[1], [0], [0], [1], [0, 0, 1, 1], [], []>} : vector<8x128xbf16>, vector<128x128xbf16>, vector<8x128xf32> -> vector<8x128xf32>
    %c0_15 = arith.constant 0 : index
    %c0_16 = arith.constant 0 : index
    %20 = vector.load %arg7[%c0_15, %c0_16] : memref<1x128xf32, #tpu.memory_space<vmem>>, vector<1x128xf32>
    %21 = vector.broadcast %20 : vector<1x128xf32> to vector<8x128xf32>
    %22 = arith.addf %19, %21 : vector<8x128xf32>
    %cst_17 = arith.constant 0.000000e+00 : f32
    %23 = vector.broadcast %cst_17 : f32 to vector<8x128xf32>
    %24 = arith.maximumf %22, %23 : vector<8x128xf32>
    %c0_18 = arith.constant 0 : index
    %c0_19 = arith.constant 0 : index
    %25 = vector.load %arg8[%c0_18, %c0_19] : memref<8x128xbf16, #tpu.memory_space<vmem>>, vector<8x128xbf16>
    %26 = arith.truncf %24 : vector<8x128xf32> to vector<8x128xbf16>
    %cst_20 = arith.constant dense<0.000000e+00> : vector<8x8xf32>
    %27 = tpu.matmul %25, %26, %cst_20 {dimension_numbers = #tpu.dot_dimension_numbers<[1], [1], [0], [0], [0, 0, 1, 0], [], []>} : vector<8x128xbf16>, vector<8x128xbf16>, vector<8x8xf32> -> vector<8x8xf32>
    %c0_21 = arith.constant 0 : index
    %c0_22 = arith.constant 0 : index
    %28 = vector.load %arg9[%c0_21, %c0_22] : memref<8x1xf32, #tpu.memory_space<vmem>>, vector<8x1xf32>
    %29 = vector.broadcast %28 : vector<8x1xf32> to vector<8x8xf32>
    %30 = arith.addf %27, %29 : vector<8x8xf32>
    %c0_23 = arith.constant 0 : index
    %c0_24 = arith.constant 0 : index
    %31 = vector.load %arg10[%c0_23, %c0_24] : memref<8x8xf32, #tpu.memory_space<vmem>>, vector<8x8xf32>
    tpu.vector_store %arg10[%c0_23, %c0_24], %30 {strides = array<i32>} : memref<8x8xf32, #tpu.memory_space<vmem>>, vector<8x8xf32>,
    return
  }
  func.func @transform_0(%arg0: i32) -> (i32, i32) {
    %c0_i32 = arith.constant 0 : i32
    %c0_i32_0 = arith.constant 0 : i32
    return %arg0, %c0_i32 : i32, i32
  }
  func.func @transform_1(%arg0: i32) -> (i32, i32) {
    %c0_i32 = arith.constant 0 : i32
    %c0_i32_0 = arith.constant 0 : i32
    %c0_i32_1 = arith.constant 0 : i32
    return %c0_i32, %c0_i32_0 : i32, i32
  }
  func.func @transform_2(%arg0: i32) -> (i32, i32) {
    %c0_i32 = arith.constant 0 : i32
    %c0_i32_0 = arith.constant 0 : i32
    %c0_i32_1 = arith.constant 0 : i32
    return %c0_i32, %c0_i32_0 : i32, i32
  }
  func.func @transform_3(%arg0: i32) -> (i32, i32) {
    %c0_i32 = arith.constant 0 : i32
    %c0_i32_0 = arith.constant 0 : i32
    %c0_i32_1 = arith.constant 0 : i32
    return %c0_i32, %c0_i32_0 : i32, i32
  }
  func.func @transform_4(%arg0: i32) -> (i32, i32) {
    %c0_i32 = arith.constant 0 : i32
    %c0_i32_0 = arith.constant 0 : i32
    %c0_i32_1 = arith.constant 0 : i32
    return %c0_i32, %c0_i32_0 : i32, i32
  }
  func.func @transform_5(%arg0: i32) -> (i32, i32) {
    %c0_i32 = arith.constant 0 : i32
    %c0_i32_0 = arith.constant 0 : i32
    %c0_i32_1 = arith.constant 0 : i32
    return %c0_i32, %c0_i32_0 : i32, i32
  }
  func.func @transform_6(%arg0: i32) -> (i32, i32) {
    %c0_i32 = arith.constant 0 : i32
    %c0_i32_0 = arith.constant 0 : i32
    %c0_i32_1 = arith.constant 0 : i32
    return %c0_i32, %c0_i32_0 : i32, i32
  }
  func.func @transform_7(%arg0: i32) -> (i32, i32) {
    %c0_i32 = arith.constant 0 : i32
    %c0_i32_0 = arith.constant 0 : i32
    %c0_i32_1 = arith.constant 0 : i32
    return %c0_i32, %c0_i32_0 : i32, i32
  }
  func.func @transform_8(%arg0: i32) -> (i32, i32) {
    %c0_i32 = arith.constant 0 : i32
    %c0_i32_0 = arith.constant 0 : i32
    %c0_i32_1 = arith.constant 0 : i32
    return %c0_i32, %c0_i32_0 : i32, i32
  }
  func.func @transform_9(%arg0: i32) -> (i32, i32) {
    %c0_i32 = arith.constant 0 : i32
    %c0_i32_0 = arith.constant 0 : i32
    return %c0_i32, %arg0 : i32, i32
  }
}

</mosaic_0001>

<bundles_post_ra>
// kernel: tpu_custom_call.1
= control target key start
LH: loop header
LB: loop body
LE: loop exit
PB: predicated region body
PF: predicated region fallthrough
CT: control target
= control target key end

     0   :  { %14 = vsyncpa [#allocation3], 0  ;;  %s1153_s0 = inlined_call_operand.hbm [shape: f32[8,256], index: 0, kind: input, shape index: {}]   ;;  %s1154_s1 = inlined_call_operand.hbm [shape: bf16[256,256], index: 1, kind: input, shape index: {}]   ;;  %s1155_s2 = inlined_call_operand.vmem [shape: f32[1,256], index: 2, kind: input, shape index: {}]   ;;  %s1156_s3 = inlined_call_operand.hbm [shape: bf16[256,128], index: 3, kind: input, shape index: {}]   ;;  %s1157_s4 = inlined_call_operand.vmem [shape: f32[1,128], index: 4, kind: input, shape index: {}]   ;;  %s1158_s5 = inlined_call_operand.hbm [shape: bf16[128,128], index: 5, kind: input, shape index: {}]   ;;  %s1159_s6 = inlined_call_operand.vmem [shape: f32[1,128], index: 6, kind: input, shape index: {}]   ;;  %s1160_s7 = inlined_call_operand.vmem [shape: bf16[8,128], index: 7, kind: input, shape index: {}]   ;;  %s1161_s8 = inlined_call_operand.vmem [shape: f32[8,1], index: 8, kind: input, shape index: {}]   ;;  %s1162_s9 = inlined_call_operand.hbm [shape: f32[8,8], index: 9, kind: output, shape index: {}]  }
   0x1   :  { %15 = vsyncpa [#allocation6], 0 }
   0x2   :  { %16 = vsyncpa [#allocation9], 0 }
   0x3   :  { %17 = vsyncpa [#allocation4], 0  ;;  %s1016_s30 = smov [#allocation5]   ;;  %s898_s13 = scalar_lea.hbm %s1154_s1, 4096 }
   0x4   :  { %s33_s10 = sshll.u32 %s1016_s30, 4  ;;  %p899_p0 = scmp.ne.s32.totalorder %s1154_s1, %s898_s13  ;;  %s34_s10 = int_to_ptr.vmem [resolvable:$true] %s33_s10 }
   0x5   :  { %p902_p1 = scmp.lt.u32.totalorder %s898_s13, %s1154_s1 }
   0x7   :  { %p904_p2 = pnand %p902_p1, %p899_p0 }
   0x9   :  { %907 = shalt.err (!%p904_p2)
}
   0xa   :  { %s908_s18 = scalar_lea.vmem %s34_s10, 4096  ;;  %p913_p4 = scmp.lt.s32.totalorder %s34_s10, %s34_s10 }
   0xb   :  { %p909_p3 = scmp.ne.s32.totalorder %s34_s10, %s908_s18  ;;  %p914_p5 = scmp.lt.s32.totalorder %s908_s18, %s908_s18 }
   0xd   :  { %p915_p6 = por %p914_p5, %p913_p4 }
   0xf   :  { %p916_p7 = pnand %p915_p6, %p909_p3 }
  0x11   :  { %919 = shalt.err (!%p916_p7)
}
  0x12   :  { %s1017_s19 = smov 128   ;;  %s1018_s20 = smov 8  }
  0x13   :  { %39 = dma.hbm_to_vmem [thread:$0]  %s1154_s1, 4096, %s34_s10, [#allocation6], %s1017_s19, %s1017_s19, %s1018_s20  }
  0x14   :  { %s1019_s23 = smov [#allocation2]   ;;  %s1020_s25 = smov [#allocation7]  }
  0x15   :  { %s24_s24 = sshll.u32 %s1019_s23, 4  ;;  %s47_s26 = sshll.u32 %s1020_s25, 4  ;;  %s25_s24 = int_to_ptr.vmem [resolvable:$true] %s24_s24  ;;  %s48_s26 = int_to_ptr.vmem [resolvable:$true] %s47_s26 }
  0x16   :  { %s920_s29 = scalar_lea.hbm %s1153_s0, 256 }
  0x17   :  { %p921_p8 = scmp.ne.s32.totalorder %s1153_s0, %s920_s29  ;;  %p924_p9 = scmp.lt.u32.totalorder %s920_s29, %s1153_s0 }
  0x19   :  { %p926_p10 = pnand %p924_p9, %p921_p8 }
  0x1b   :  { %929 = shalt.err (!%p926_p10)
}
  0x1c   :  { %s930_s1 = scalar_lea.vmem %s25_s24, 256  ;;  %p935_p12 = scmp.lt.s32.totalorder %s25_s24, %s25_s24 }
  0x1d   :  { %p931_p11 = scmp.ne.s32.totalorder %s25_s24, %s930_s1  ;;  %p936_p13 = scmp.lt.s32.totalorder %s930_s1, %s930_s1 }
  0x1f   :  { %p937_p0 = por %p936_p13, %p935_p12 }
  0x21   :  { %p938_p1 = pnand %p937_p0, %p931_p11 }
  0x23   :  { %941 = shalt.err (!%p938_p1)
}
  0x24   :  { %27 = dma.hbm_to_vmem [thread:$0]  %s1153_s0, 256, %s25_s24, [#allocation3]  }
  0x25   :  { %s942_s17 = scalar_lea.hbm %s1156_s3, 2048 }
  0x26   :  { %p943_p2 = scmp.ne.s32.totalorder %s1156_s3, %s942_s17  ;;  %p946_p3 = scmp.lt.u32.totalorder %s942_s17, %s1156_s3 }
  0x28   :  { %p948_p4 = pnand %p946_p3, %p943_p2 }
  0x2a   :  { %951 = shalt.err (!%p948_p4)
}
  0x2b   :  { %s952_s22 = scalar_lea.vmem %s48_s26, 2048  ;;  %p957_p6 = scmp.lt.s32.totalorder %s48_s26, %s48_s26 }
  0x2c   :  { %p953_p5 = scmp.ne.s32.totalorder %s48_s26, %s952_s22  ;;  %p958_p7 = scmp.lt.s32.totalorder %s952_s22, %s952_s22 }
  0x2e   :  { %p959_p8 = por %p958_p7, %p957_p6 }
  0x30   :  { %p960_p9 = pnand %p959_p8, %p953_p5 }
  0x32   :  { %963 = shalt.err (!%p960_p9)
}
  0x33   :  { %s1021_s0 = smov 64   ;;  %s1022_s23 = smov 4  }
  0x34   :  { %53 = dma.hbm_to_vmem [thread:$0]  %s1156_s3, 2048, %s48_s26, [#allocation6], %s1021_s0, %s1021_s0, %s1022_s23  }
  0x35   :  { %s1023_s27 = smov [#allocation8]   ;;  %s964_s11 = scalar_lea.hbm %s1158_s5, 1024 }
  0x36   :  { %s61_s28 = sshll.u32 %s1023_s27, 4  ;;  %p965_p10 = scmp.ne.s32.totalorder %s1158_s5, %s964_s11  ;;  %s62_s28 = int_to_ptr.vmem [resolvable:$true] %s61_s28 }
  0x37   :  { %p968_p11 = scmp.lt.u32.totalorder %s964_s11, %s1158_s5 }
  0x39   :  { %p970_p12 = pnand %p968_p11, %p965_p10 }
  0x3b   :  { %973 = shalt.err (!%p970_p12)
}
  0x3c   :  { %s974_s14 = scalar_lea.vmem %s62_s28, 1024  ;;  %p979_p0 = scmp.lt.s32.totalorder %s62_s28, %s62_s28 }
  0x3d   :  { %p975_p13 = scmp.ne.s32.totalorder %s62_s28, %s974_s14  ;;  %p980_p1 = scmp.lt.s32.totalorder %s974_s14, %s974_s14 }
  0x3f   :  { %p981_p2 = por %p980_p1, %p979_p0 }
  0x41   :  { %p982_p3 = pnand %p981_p2, %p975_p13 }
  0x43   :  { %985 = shalt.err (!%p982_p3)
}
  0x44   :  { %67 = dma.hbm_to_vmem [thread:$0]  %s1158_s5, 1024, %s62_s28, [#allocation9], %s1021_s0, %s1021_s0, %s1022_s23  }
  0x45   :  { %1008 = dma.done.wait [#allocation3], 256  }
  0x46   :  { %1009 = vsyncadd [#allocation3], 4294967040 }
  0x47   :  { %1010 = dma.done.wait [#allocation6], 6144  }
  0x48   :  { %1011 = vsyncadd [#allocation6], 4294961152 }
  0x49   :  { %1012 = dma.done.wait [#allocation9], 1024  }
  0x4a   :  { %1013 = vsyncadd [#allocation9], 4294966272  ;;  %v826_v0 = vld [vmem:[#allocation5 + $0x4] ss:$8 sps:$4 sm:$0xff]   ;;  %v828_v1 = vld [vmem:[#allocation5] ss:$8 sps:$4 sm:$0xff]   ;;  %v125_v53 = vlaneseq }
  0x4b   :  { %295 = vmatprep.subr.bf16.mxu0 %v826_v0  ;;  %v829_v2 = vld [vmem:[#allocation5 + $0x14] ss:$8 sps:$4 sm:$0xff]   ;;  %v831_v3 = vld [vmem:[#allocation5 + $0x10] ss:$8 sps:$4 sm:$0xff]   ;;  %v832_v4 = vld [vmem:[#allocation5 + $0x24] ss:$8 sps:$4 sm:$0xff]  }
  0x4c   :  { %296 = vmatpush1.bf16.msra.mxu0 %v828_v1  ;;  %v834_v5 = vld [vmem:[#allocation5 + $0x20] ss:$8 sps:$4 sm:$0xff]   ;;  %v835_v6 = vld [vmem:[#allocation5 + $0x34] ss:$8 sps:$4 sm:$0xff]   ;;  %v837_v7 = vld [vmem:[#allocation5 + $0x30] ss:$8 sps:$4 sm:$0xff]  }
  0x4d   :  { %297 = vmatprep.subr.bf16.mxu0 %v829_v2  ;;  %v838_v8 = vld [vmem:[#allocation5 + $0x44] ss:$8 sps:$4 sm:$0xff]   ;;  %v840_v9 = vld [vmem:[#allocation5 + $0x40] ss:$8 sps:$4 sm:$0xff]   ;;  %v841_v10 = vld [vmem:[#allocation5 + $0x54] ss:$8 sps:$4 sm:$0xff]  }
  0x4e   :  { %v843_v11 = vld [vmem:[#allocation5 + $0x50] ss:$8 sps:$4 sm:$0xff]   ;;  %v844_v12 = vld [vmem:[#allocation5 + $0x64] ss:$8 sps:$4 sm:$0xff]   ;;  %v846_v13 = vld [vmem:[#allocation5 + $0x60] ss:$8 sps:$4 sm:$0xff]  }
  0x4f   :  { %v88_v14 = vld [vmem:[#allocation2 + $0x8] sm:$0xff]  ;;  %v874_v17 = vld [vmem:[#allocation7 + $0x40] sm:$0xff]   ;;  %v876_v19 = vld [vmem:[#allocation7 + $0x48] sm:$0xff]   ;;  %v1024_v52 = vmov 0.0   ;;  %v126_v54 = vshrl.u32 %v125_v53, 7  ;;  %vm1025_vm0 = vmmov 0  }
  0x50   :  { %298 = vmatpush1.bf16.msra.mxu0 %v831_v3  ;;  %v847_v15 = vld [vmem:[#allocation5 + $0x74] ss:$8 sps:$4 sm:$0xff]   ;;  %v90_v16 = vpack.c.bf16 %v88_v14, %v88_v14  ;;  %v875_v18 = vld [vmem:[#allocation7] sm:$0xff]   ;;  %v849_v20 = vld [vmem:[#allocation5 + $0x70] ss:$8 sps:$4 sm:$0xff]   ;;  %754 = vmatprep.subr.bf16.mxu1 %v874_v17  ;;  %vm677_vm1 = vcmask 64512  }
  0x51   :  { %299 = vmatprep.subr.bf16.mxu0 %v832_v4  ;;  %755 = vmatpush3.bf16.msra.mxu1 %v875_v18  ;;  %v877_v21 = vld [vmem:[#allocation7 + $0x8] sm:$0xff]   ;;  %v878_v22 = vld [vmem:[#allocation7 + $0x50] sm:$0xff]   ;;  %v880_v26 = vld [vmem:[#allocation7 + $0x58] sm:$0xff]   ;;  %v127_v55 = vsub.s32 0, %v126_v54  ;;  %v131_v57 = vsub.s32 1, %v126_v54 }
  0x52   :  { %327 = vmatprep.mubr.bf16.mxu0 %v90_v16  ;;  %756 = vmatprep.subr.bf16.mxu1 %v876_v19  ;;  %v850_v23 = vld [vmem:[#allocation5 + $0x84] ss:$8 sps:$4 sm:$0xff]   ;;  %v852_v24 = vld [vmem:[#allocation5 + $0x80] ss:$8 sps:$4 sm:$0xff]   ;;  %v879_v25 = vld [vmem:[#allocation7 + $0x10] sm:$0xff]  }
  0x53   :  { %v853_v27 = vld [vmem:[#allocation5 + $0x94] ss:$8 sps:$4 sm:$0xff]   ;;  %v855_v28 = vld [vmem:[#allocation5 + $0x90] ss:$8 sps:$4 sm:$0xff]   ;;  %v856_v30 = vld [vmem:[#allocation5 + $0xa4] ss:$8 sps:$4 sm:$0xff]  }
  0x54   :  { %300 = vmatpush1.bf16.msra.mxu0 %v834_v5  ;;  %v881_v29 = vld [vmem:[#allocation7 + $0x18] sm:$0xff]   ;;  %v882_v31 = vld [vmem:[#allocation7 + $0x60] sm:$0xff]   ;;  %v884_v34 = vld [vmem:[#allocation7 + $0x68] sm:$0xff]  }
  0x55   :  { %301 = vmatprep.subr.bf16.mxu0 %v835_v6  ;;  %757 = vmatpush3.bf16.msra.mxu1 %v877_v21  ;;  %v883_v32 = vld [vmem:[#allocation7 + $0x20] sm:$0xff]   ;;  %v859_v35 = vld [vmem:[#allocation5 + $0xb4] ss:$8 sps:$4 sm:$0xff]   ;;  %v885_v36 = vld [vmem:[#allocation7 + $0x28] sm:$0xff]  }
  0x56   :  { %758 = vmatprep.subr.bf16.mxu1 %v878_v22  ;;  %v858_v33 = vld [vmem:[#allocation5 + $0xa0] ss:$8 sps:$4 sm:$0xff]   ;;  %v861_v37 = vld [vmem:[#allocation5 + $0xb0] ss:$8 sps:$4 sm:$0xff]   ;;  %v862_v38 = vld [vmem:[#allocation5 + $0xc4] ss:$8 sps:$4 sm:$0xff]  }
  0x57   :  { %v864_v39 = vld [vmem:[#allocation5 + $0xc0] ss:$8 sps:$4 sm:$0xff]   ;;  %v865_v40 = vld [vmem:[#allocation5 + $0xd4] ss:$8 sps:$4 sm:$0xff]   ;;  %v867_v41 = vld [vmem:[#allocation5 + $0xd0] ss:$8 sps:$4 sm:$0xff]  }
  0x58   :  { %302 = vmatpush1.bf16.msra.mxu0 %v837_v7  ;;  %v868_v42 = vld [vmem:[#allocation5 + $0xe4] ss:$8 sps:$4 sm:$0xff]   ;;  %v870_v43 = vld [vmem:[#allocation5 + $0xe0] ss:$8 sps:$4 sm:$0xff]   ;;  %v871_v44 = vld [vmem:[#allocation5 + $0xf4] ss:$8 sps:$4 sm:$0xff]  }
  0x59   :  { %303 = vmatprep.subr.bf16.mxu0 %v838_v8  ;;  %759 = vmatpush3.bf16.msra.mxu1 %v879_v25  ;;  %v873_v45 = vld [vmem:[#allocation5 + $0xf0] ss:$8 sps:$4 sm:$0xff]   ;;  %v890_v5 = vld [vmem:[#allocation8] sm:$0xff]   ;;  %v891_v7 = vld [vmem:[#allocation8 + $0x8] sm:$0xff]  }
  0x5a   :  { %760 = vmatprep.subr.bf16.mxu1 %v880_v26  ;;  %v87_v46 = vld [vmem:[#allocation2] sm:$0xff]  ;;  %v888_v50 = vld [vmem:[#allocation7 + $0x78] sm:$0xff]  }
  0x5b   :  { %v89_v47 = vpack.c.bf16 %v87_v46, %v87_v46  ;;  %v886_v48 = vld [vmem:[#allocation7 + $0x70] sm:$0xff]   ;;  %v889_v51 = vld [vmem:[#allocation7 + $0x38] sm:$0xff]  }
  0x5c   :  { %304 = vmatpush1.bf16.msra.mxu0 %v840_v9  ;;  %v887_v49 = vld [vmem:[#allocation7 + $0x30] sm:$0xff]   ;;  %v893_v9 = vld [vmem:[#allocation8 + $0x18] sm:$0xff]  }
  0x5d   :  { %305 = vmatprep.subr.bf16.mxu0 %v841_v10  ;;  %761 = vmatpush3.bf16.msra.mxu1 %v881_v29  ;;  %v123_v56 = vld [vmem:[%s1155_s2] sm:$0x3]  ;;  %v894_v10 = vld [vmem:[#allocation8 + $0x20] sm:$0xff]  }
  0x5e   :  { %762 = vmatprep.subr.bf16.mxu1 %v882_v31  ;;  %v128_v58 = vrot.slane %v123_v56, %v127_v55  ;;  %v132_v59 = vrot.slane %v123_v56, %v131_v57  ;;  %v892_v8 = vld [vmem:[#allocation8 + $0x10] sm:$0xff]  }
  0x5f   :  { %v745_v25 = vld [vmem:[%s1159_s6] ss:$0 sm:$0xff] }
  0x60   :  { %306 = vmatpush1.bf16.msra.mxu0 %v843_v11  ;;  %v895_v11 = vld [vmem:[#allocation8 + $0x28] sm:$0xff]  }
  0x61   :  { %307 = vmatprep.subr.bf16.mxu0 %v844_v12  ;;  %763 = vmatpush3.bf16.msra.mxu1 %v883_v32  ;;  %v896_v12 = vld [vmem:[#allocation8 + $0x30] sm:$0xff]  }
  0x62   :  { %764 = vmatprep.subr.bf16.mxu1 %v884_v34 }
  0x64   :  { %308 = vmatpush1.bf16.msra.mxu0 %v846_v13  ;;  %v897_v13 = vld [vmem:[#allocation8 + $0x38] sm:$0xff]  }
  0x65   :  { %309 = vmatprep.subr.bf16.mxu0 %v847_v15  ;;  %765 = vmatpush3.bf16.msra.mxu1 %v885_v36  ;;  %v728_v15 = vld [vmem:[%s1157_s4] ss:$0 sm:$0xff] }
  0x66   :  { %766 = vmatprep.subr.bf16.mxu1 %v886_v48 }
  0x68   :  { %310 = vmatpush1.bf16.msra.mxu0 %v849_v20 }
  0x69   :  { %311 = vmatprep.subr.bf16.mxu0 %v850_v23  ;;  %767 = vmatpush3.bf16.msra.mxu1 %v887_v49  ;;  %v631_v23 = vld [vmem:[%s1161_s8] sm:$0xff]  ;;  %s1027_s8 = smov [#allocation10]  }
  0x6a   :  { %768 = vmatprep.subr.bf16.mxu1 %v888_v50  ;;  %s685_s22 = sshll.u32 %s1027_s8, 4  ;;  %s686_s22 = int_to_ptr.vmem [resolvable:$true] %s685_s22 }
  0x6b   :  { %s986_s6 = scalar_lea.vmem %s686_s22, 128  ;;  %p991_p5 = scmp.lt.s32.totalorder %s686_s22, %s686_s22 }
  0x6c   :  { %312 = vmatpush1.bf16.msra.mxu0 %v852_v24  ;;  %v1026_v24 = vmov 0   ;;  %p987_p4 = scmp.ne.s32.totalorder %s686_s22, %s986_s6  ;;  %p992_p6 = scmp.lt.s32.totalorder %s986_s6, %s986_s6 }
  0x6d   :  { %313 = vmatprep.subr.bf16.mxu0 %v853_v27  ;;  %769 = vmatpush3.bf16.msra.mxu1 %v889_v51 }
  0x6e   :  { %787 = vmatprep.subr.bf16.mxu1 %v1024_v52  ;;  %825 = vset.pattern.permute.xlu0 %v1026_v24  ;;  %p993_p7 = por %p992_p6, %p991_p5 }
  0x6f   :  { %634 = vperm.xlu0 %825, %v631_v23  }
  0x70   :  { %314 = vmatpush1.bf16.msra.mxu0 %v855_v28  ;;  %p994_p8 = pnand %p993_p7, %p987_p4 }
  0x71   :  { %315 = vmatprep.subr.bf16.mxu0 %v856_v30 }
  0x74   :  { %316 = vmatpush1.bf16.msra.mxu0 %v858_v33  ;;  %v629_v33 = vld [vmem:[%s1160_s7] sm:$0xf] }
  0x75   :  { %317 = vmatprep.subr.bf16.mxu0 %v859_v35 }
  0x78   :  { %318 = vmatpush1.bf16.msra.mxu0 %v861_v37 }
  0x79   :  { %319 = vmatprep.subr.bf16.mxu0 %v862_v38 }
  0x7c   :  { %320 = vmatpush1.bf16.msra.mxu0 %v864_v39 }
  0x7d   :  { %321 = vmatprep.subr.bf16.mxu0 %v865_v40 }
  0x80   :  { %322 = vmatpush1.bf16.msra.mxu0 %v867_v41 }
  0x81   :  { %323 = vmatprep.subr.bf16.mxu0 %v868_v42 }
  0x84   :  { %324 = vmatpush1.bf16.msra.mxu0 %v870_v43 }
  0x85   :  { %325 = vmatprep.subr.bf16.mxu0 %v871_v44 }
  0x88   :  { %326 = vmatpush1.bf16.msra.mxu0 %v873_v45 }
  0x89   :  { %807 = vmatprep.subr.bf16.mxu0 %v1024_v52 }
  0x8b   :  { %328 = vmatmul.mubr.bf16.vlgmr.msra.gmra.mrb[0].mxu0 %v89_v47 }
  0x8c   :  { %809 = vmatprep.mubr.msk.bf16.mxu0 %vm1025_vm0, %v1024_v52 }
  0xee   :  { %v635_v34 = vpop.permute.xlu0 %634 }
 0x15e   :  { %v329_v60 = vpop.f32.mrb[0].mxu0 }
 0x15f   :  { %v330_v61 = vadd.f32 %v329_v60, %v128_v58  ;;  %v331_v62 = vpop.f32.mrb[1].mxu0 }
 0x160   :  { %v332_v63 = vadd.f32 %v331_v62, %v132_v59  ;;  %v333_v0 = vpop.f32.mrb[2].mxu0 }
 0x161   :  { %v336_v1 = vmax.f32 %v330_v61, 0.0  ;;  %v334_v2 = vpop.f32.mrb[3].mxu0 }
 0x162   :  { %v337_v3 = vmax.f32 %v332_v63, 0.0 }
 0x163   :  { %v338_v6 = vpack.c.bf16 %v336_v1, %v336_v1 }
 0x164   :  { %v339_v4 = vpack.c.bf16 %v337_v3, %v337_v3 }
 0x166   :  { %507 = vmatprep.mubr.bf16.mxu1 %v339_v4 }
 0x167   :  { %508 = vmatmul.mubr.bf16.vlgmr.msra.gmra.mrb[0].mxu1 %v338_v6 }
 0x168   :  { %788 = vmatpush3.bf16.msra.mxu1 %v890_v5  ;;  %803 = vmatprep.mubr.msk.bf16.mxu1 %vm1025_vm0, %v1024_v52 }
 0x169   :  { %789 = vmatprep.subr.bf16.mxu1 %v1024_v52 }
 0x16c   :  { %790 = vmatpush3.bf16.msra.mxu1 %v891_v7 }
 0x16d   :  { %791 = vmatprep.subr.bf16.mxu1 %v1024_v52 }
 0x170   :  { %792 = vmatpush3.bf16.msra.mxu1 %v892_v8 }
 0x171   :  { %793 = vmatprep.subr.bf16.mxu1 %v1024_v52 }
 0x174   :  { %794 = vmatpush3.bf16.msra.mxu1 %v893_v9 }
 0x175   :  { %795 = vmatprep.subr.bf16.mxu1 %v1024_v52 }
 0x178   :  { %796 = vmatpush3.bf16.msra.mxu1 %v894_v10 }
 0x179   :  { %797 = vmatprep.subr.bf16.mxu1 %v1024_v52 }
 0x17c   :  { %798 = vmatpush3.bf16.msra.mxu1 %v895_v11 }
 0x17d   :  { %799 = vmatprep.subr.bf16.mxu1 %v1024_v52 }
 0x180   :  { %800 = vmatpush3.bf16.msra.mxu1 %v896_v12 }
 0x181   :  { %801 = vmatprep.subr.bf16.mxu1 %v1024_v52 }
 0x184   :  { %802 = vmatpush3.bf16.msra.mxu1 %v897_v13 }
 0x23a   :  { %v770_v14 = vpop.f32.mrb[0].mxu1 }
 0x23b   :  { %v771_v16 = vpop.f32.mrb[1].mxu1 }
 0x23c   :  { %v772_v17 = vadd.f32 %v771_v16, %v770_v14  ;;  %v773_v18 = vpop.f32.mrb[2].mxu1 }
 0x23d   :  { %v774_v19 = vpop.f32.mrb[3].mxu1 }
 0x23e   :  { %v510_v20 = vadd.f32 %v772_v17, %v728_v15 }
 0x240   :  { %v515_v21 = vmax.f32 %v510_v20, 0.0 }
 0x242   :  { %v516_v22 = vpack.c.bf16 %v515_v21, %v515_v21 }
 0x244   :  { %804 = vmatmul.mubr.bf16.vlgmr.msra.gmra.mrb[4].mxu1 %v516_v22 }
 0x317   :  { %v622_v26 = vpop.f32.mrb[4].mxu1 }
 0x318   :  { %v623_v27 = vadd.f32 %v745_v25, %v622_v26  ;;  %v805_v28 = vpop.f32.mrb[5].mxu1 }
 0x319   :  { %v625_v29 = vpop.f32.mrb[6].mxu1 }
 0x31a   :  { %v628_v30 = vmax.f32 %v623_v27, 0.0  ;;  %v806_v31 = vpop.f32.mrb[7].mxu1 }
 0x31c   :  { %v630_v32 = vpack.c.bf16 %v628_v30, %v628_v30 }
 0x31e   :  { %808 = vmatpush3.bf16.xpose.msra.mxu0 %v630_v32 }
 0x325   :  { %810 = vmatmul.mubr.bf16.vlgmr.msra.gmra.mrb[4].mxu0 %v629_v33 }
 0x3f8   :  { %v671_v35 = vpop.f32.mrb[4].mxu0 }
 0x3f9   :  { %v672_v36 = vadd.f32 %v671_v35, %v635_v34  ;;  %v811_v37 = vpop.f32.mrb[5].mxu0 }
 0x3fa   :  { %v674_v38 = vpop.f32.mrb[6].mxu0 }
 0x3fb   :  { %v812_v39 = vpop.f32.mrb[7].mxu0  ;;  %678 = vst.msk [vmem:[#allocation10] sm:$0xff] %vm677_vm1, %v672_v36 }
 0x3fc   :  { %997 = shalt.err (!%p994_p8)
}
 0x3fd   :  { %s998_s23 = scalar_lea.hbm %s1162_s9, 128 }
 0x3fe   :  { %p999_p9 = scmp.ne.s32.totalorder %s1162_s9, %s998_s23  ;;  %p1002_p10 = scmp.lt.u32.totalorder %s998_s23, %s1162_s9 }
 0x400   :  { %p1004_p11 = pnand %p1002_p10, %p999_p9 }
 0x402   :  { %1007 = shalt.err (!%p1004_p11)
}
 0x403   :  { %688 = dma.vmem_to_hbm [thread:$0]  %s686_s22, 128, %s1162_s9, [#allocation4]  }
 0x404   :  { %1014 = dma.done.wait [#allocation4], 128  }
 0x405   :  { %1015 = vsyncadd [#allocation4], 4294967168 }
 0x406   :  { %692 = vsyncpa [#allocation3], 1 }
 0x407   :  { %693 = vsyncpa [#allocation6], 1 }
 0x408   :  { %694 = vsyncpa [#allocation9], 1 }
 0x409   :  { %695 = vsyncpa [#allocation4], 1 }

</bundles_post_ra>
